<compile_context>
chip_gen: v7x
topology: tpu7x:2x2x1
jax: 0.10.0
libtpu: 0.0.40
codegen_flags: <defaults>
</compile_context>

<pallas_src>
import jax
import jax.numpy as jnp
from jax.experimental import pallas as pl
from jax.experimental.pallas import tpu as pltpu

VMEM_LIMIT = 32 * 1024 * 1024  # sized for v7x (64 MiB physical); plenty on v5e/v6e


# ----------------------------------------------------------------------------
# Kernel: bf16 matmul (BN scale pre-folded into weights) + bias + ReLU epilogue
# ----------------------------------------------------------------------------
def _pw_matmul_bias_relu_kernel(a_ref, w_ref, b_ref, o_ref):
    # a:(tm,K) bf16, w:(K,tn) bf16 (already BN-scaled), b:(1,tn) f32
    acc = jnp.dot(a_ref[...], w_ref[...], preferred_element_type=jnp.float32)
    o_ref[...] = jnp.maximum(acc + b_ref[...], 0.0)


def _pick_tile(dim, unit, cap):
    """Largest multiple of `unit` that divides `dim` and is <= cap; else full dim."""
    if dim % unit != 0:
        return dim
    best = unit
    d = unit
    while d <= min(dim, cap):
        if dim % d == 0:
            best = d
        d += unit
    return best


def pointwise_conv_bn_relu(x_nchw, w_oc, gamma, beta, mean, var, stride=1, eps=1e-5):
    """relu(BN(conv1x1(x)))  — PyTorch PointWiseNet forward (inference-mode BN).

    x_nchw: (B, Cin, H, W) f32   w_oc: (Cout, Cin)   gamma/beta/mean/var: (Cout,)
    returns (B, Cout, Ho, Wo) f32 with Ho = (H-1)//stride + 1.
    """
    B, Cin, H, W = x_nchw.shape
    Cout = w_oc.shape[0]

    # stride of a 1x1 conv (pad=0) == spatial subsample; do it before the matmul.
    xs = x_nchw[:, :, ::stride, ::stride]
    Ho, Wo = xs.shape[2], xs.shape[3]

    # NCHW -> (M, K): channels on the TPU lane dimension for the MXU.
    a = jnp.transpose(xs, (0, 2, 3, 1)).reshape(B * Ho * Wo, Cin)

    # Fold BN: scale goes into the weights (offline), only the bias add stays in-kernel.
    scale = gamma * jax.lax.rsqrt(var + eps)                      # (Cout,)
    bias = (beta - mean * scale).reshape(1, Cout).astype(jnp.float32)
    w_kn = (w_oc.T * scale[None, :]).astype(jnp.bfloat16)          # (Cin, Cout), bf16
    a = a.astype(jnp.bfloat16)

    M, K = a.shape
    N = Cout

    # Sublane alignment for the M tiling (full-extent blocks are always legal,
    # but padding lets us split M and keep both TensorCores busy).
    pad_m = (-M) % 8
    if pad_m:
        a = jnp.pad(a, ((0, pad_m), (0, 0)))
    Mp = M + pad_m

    # Tile selection: big M tiles (few grid steps -> low per-step overhead) but
    # at least 2 parallel steps when possible so a second core (v7x) isn't idle.
    tm = _pick_tile(Mp, 8, 2048)
    if tm == Mp and Mp % 16 == 0:
        tm = Mp // 2
    tn = _pick_tile(N, 128, 512)   # lane-aligned Cout tiles for wide layers
    # TODO(synk): for Cout < 128 the output store is lane-masked; padding Cout to
    # 128 would make stores lane-dense but adds a slice copy — skipped here.

    out = pl.pallas_call(
        _pw_matmul_bias_relu_kernel,
        out_shape=jax.ShapeDtypeStruct((Mp, N), jnp.float32),
        grid=(Mp // tm, N // tn),
        in_specs=[
            pl.BlockSpec((tm, K), lambda mi, ni: (mi, 0)),
            pl.BlockSpec((K, tn), lambda mi, ni: (0, ni)),
            pl.BlockSpec((1, tn), lambda mi, ni: (0, ni)),
        ],
        out_specs=pl.BlockSpec((tm, tn), lambda mi, ni: (mi, ni)),
        compiler_params=pltpu.CompilerParams(
            dimension_semantics=("parallel", "parallel"),
            vmem_limit_bytes=VMEM_LIMIT,
        ),
    )(a, w_kn, bias)

    if pad_m:
        out = out[:M]
    return jnp.transpose(out.reshape(B, Ho, Wo, Cout), (0, 3, 1, 2))  # back to NCHW


if __name__ == "__main__":
    key = jax.random.PRNGKey(0)
    k1, k2, k3, k4, k5, k6 = jax.random.split(key, 6)

    B, Cin, H, W = 2, 16, 16, 16
    Cout, stride = 32, 2

    x = jax.random.normal(k1, (B, Cin, H, W), jnp.float32)
    w = jax.random.normal(k2, (Cout, Cin), jnp.float32) * jnp.sqrt(2.0 / Cin)
    gamma = 1.0 + 0.1 * jax.random.normal(k3, (Cout,), jnp.float32)
    beta = 0.1 * jax.random.normal(k4, (Cout,), jnp.float32)
    mean = 0.1 * jax.random.normal(k5, (Cout,), jnp.float32)
    var = jnp.abs(1.0 + 0.1 * jax.random.normal(k6, (Cout,), jnp.float32))

    fwd = jax.jit(pointwise_conv_bn_relu, static_argnames=("stride", "eps"))
    out = jax.block_until_ready(fwd(x, w, gamma, beta, mean, var, stride=stride))

    Ho, Wo = (H - 1) // stride + 1, (W - 1) // stride + 1
    assert out.shape == (B, Cout, Ho, Wo), out.shape
    assert bool(jnp.all(jnp.isfinite(out)))

    # pure-JAX reference (inference-mode BatchNorm); loose tol for the bf16 MXU path
    xs = x[:, :, ::stride, ::stride]
    ref = jnp.einsum("oc,nchw->nohw", w, xs)
    s = gamma / jnp.sqrt(var + 1e-5)
    ref = jnp.maximum(ref * s[None, :, None, None]
                      + (beta - mean * s)[None, :, None, None], 0.0)
    assert jnp.allclose(out, ref, atol=5e-2, rtol=5e-2), \
        float(jnp.max(jnp.abs(out - ref)))

    print("KERNEL_OK")
</pallas_src>

<mosaic_0001>
module attributes {stable_mosaic.version = 11 : i64} {
  func.func @_pw_matmul_bias_relu_kernel(%arg0: i32, %arg1: i32, %arg2: memref<64x16xbf16, #tpu.memory_space<vmem>>, %arg3: memref<16x32xbf16, #tpu.memory_space<vmem>>, %arg4: memref<1x32xf32, #tpu.memory_space<vmem>>, %arg5: memref<64x32xf32, #tpu.memory_space<vmem>>) attributes {dimension_semantics = [#tpu.dimension_semantics<parallel>, #tpu.dimension_semantics<parallel>], iteration_bounds = array<i64: 2, 1>, scalar_prefetch = 0 : i64, scratch_operands = 0 : i64, tpu.core_type = #tpu.core_type<tc>, window_params = [{transform_indices = @transform_0, window_bounds = array<i64: 64, 16>}, {transform_indices = @transform_1, window_bounds = array<i64: 16, 32>}, {transform_indices = @transform_2, window_bounds = array<i64: 1, 32>}, {transform_indices = @transform_3, window_bounds = array<i64: 64, 32>}]} {
    %c0 = arith.constant 0 : index
    %c0_0 = arith.constant 0 : index
    %0 = vector.load %arg2[%c0, %c0_0] : memref<64x16xbf16, #tpu.memory_space<vmem>>, vector<64x16xbf16>
    %c0_1 = arith.constant 0 : index
    %c0_2 = arith.constant 0 : index
    %1 = vector.load %arg3[%c0_1, %c0_2] : memref<16x32xbf16, #tpu.memory_space<vmem>>, vector<16x32xbf16>
    %cst = arith.constant dense<0.000000e+00> : vector<64x32xf32>
    %2 = tpu.matmul %0, %1, %cst {dimension_numbers = #tpu.dot_dimension_numbers<[1], [0], [0], [1], [0, 0, 1, 1], [], []>} : vector<64x16xbf16>, vector<16x32xbf16>, vector<64x32xf32> -> vector<64x32xf32>
    %c0_3 = arith.constant 0 : index
    %c0_4 = arith.constant 0 : index
    %3 = vector.load %arg4[%c0_3, %c0_4] : memref<1x32xf32, #tpu.memory_space<vmem>>, vector<1x32xf32>
    %4 = vector.broadcast %3 : vector<1x32xf32> to vector<64x32xf32>
    %5 = arith.addf %2, %4 : vector<64x32xf32>
    %cst_5 = arith.constant 0.000000e+00 : f32
    %6 = vector.broadcast %cst_5 : f32 to vector<64x32xf32>
    %7 = arith.maximumf %5, %6 : vector<64x32xf32>
    %c0_6 = arith.constant 0 : index
    %c0_7 = arith.constant 0 : index
    %8 = vector.load %arg5[%c0_6, %c0_7] : memref<64x32xf32, #tpu.memory_space<vmem>>, vector<64x32xf32>
    tpu.vector_store %arg5[%c0_6, %c0_7], %7 {strides = array<i32>} : memref<64x32xf32, #tpu.memory_space<vmem>>, vector<64x32xf32>,
    return
  }
  func.func @transform_0(%arg0: i32, %arg1: i32) -> (i32, i32) {
    %c0_i32 = arith.constant 0 : i32
    %c0_i32_0 = arith.constant 0 : i32
    return %arg0, %c0_i32 : i32, i32
  }
  func.func @transform_1(%arg0: i32, %arg1: i32) -> (i32, i32) {
    %c0_i32 = arith.constant 0 : i32
    %c0_i32_0 = arith.constant 0 : i32
    return %c0_i32, %arg1 : i32, i32
  }
  func.func @transform_2(%arg0: i32, %arg1: i32) -> (i32, i32) {
    %c0_i32 = arith.constant 0 : i32
    %c0_i32_0 = arith.constant 0 : i32
    return %c0_i32, %arg1 : i32, i32
  }
  func.func @transform_3(%arg0: i32, %arg1: i32) -> (i32, i32) {
    %c0_i32 = arith.constant 0 : i32
    return %arg0, %arg1 : i32, i32
  }
}

</mosaic_0001>

<bundles_post_ra>
// kernel: pointwise_conv_bn_relu.1
= control target key start
LH: loop header
LB: loop body
LE: loop exit
PB: predicated region body
PF: predicated region fallthrough
CT: control target
= control target key end

     0   :  { %8 = vsyncpa [#allocation3], 0  ;;  %s810_s0 = inlined_call_operand.vmem [shape: bf16[128,16], index: 0, kind: input, shape index: {}]   ;;  %s811_s1 = inlined_call_operand.vmem [shape: bf16[16,32], index: 1, kind: input, shape index: {}]   ;;  %s812_s2 = inlined_call_operand.vmem [shape: f32[1,32], index: 2, kind: input, shape index: {}]   ;;  %s813_s3 = inlined_call_operand.hbm [shape: f32[128,32], index: 3, kind: output, shape index: {}]  }
   0x1   :  { %10 = vsyncpa [#allocation3 + $0x1], 0  ;;  %s678_s12 = smov 0   ;;  %s680_s13 = smov 0  }
   0x2   :  { %s682_s14 = smov 0   ;;  %s684_s15 = smov 0  }
   0x3   :  { %s686_s16 = smov 0   ;;  %s688_s17 = smov 0  }
   0x4 LB: > { %s470_s18 = sadd.s32 4294967295, %s653_s17   ;;  %s471_s19 = sadd.s32 4294967294, %s653_s17   ;;  %s653_s17 = sphi %s688_s17, %s16_s17   ;;  %s649_s16 = sphi %s686_s16, %s820_s16   ;;  %s645_s15 = sphi %s684_s15, %s819_s15   ;;  %s641_s14 = sphi %s682_s14, %s818_s14   ;;  %s637_s13 = sphi %s680_s13, %s817_s13   ;;  %s633_s12 = sphi %s678_s12, %s816_s12  }
   0x5   : > { %s28_s20 = sadd.s32 1, %s649_s16  ;;  %s115_s21 = sadd.s32 1, %s641_s14 }
   0x6   : > { %p30_p0 = scmp.ge.s32.totalorder %s28_s20, 2  ;;  %p125_p1 = scmp.ne.s32.totalorder %s641_s14, %s637_s13 }
   0x7   : > { %p126_p2 = scmp.eq.s32.totalorder %s470_s18, 1  ;;  %p131_p3 = scmp.ne.s32.totalorder %s637_s13, %s633_s12 }
   0x8   : > { %s822_s20 = smov (%p30_p0, %s28_s20), 0  ;;  %p132_p5 = scmp.eq.s32.totalorder %s471_s19, 1 }
   0x9   : > { %p718_p4 = por %p126_p2, %p125_p1  ;;  %s110_s23 = ssub.s32 %s649_s16, %s822_s20 }
   0xa   : > { %p476_p6 = scmp.ge.s32.totalorder %s653_s17, 1  ;;  %p113_p7 = scmp.eq.s32.totalorder %s110_s23, 0 }
   0xb   : > { %p725_p8 = por %p132_p5, %p131_p3  ;;  %p172_p9 = scmp.lt.s32.totalorder %s653_s17, 3 }
   0xc   : > { %s731_s25 = scalar_select %p113_p7, %s641_s14, %s115_s21  }
   0xd   : > { %p173_p10 = pnand %p476_p6, %p172_p9 }
   0xe   : > { %v570_v0 = vld [vmem:[%s811_s1] sm:$0xff] (!%p173_p10)   ;;  %s478_s28 = sshll.u32 (!%p173_p10), %s645_s15, 3  ;;  %vm261_vm0 = vcmask (!%p173_p10), 130048   ;;  %s200_s6 = sand.u32 (!%p173_p10), 1, %s637_s13   ;;  %vm347_vm1 = vcmask (!%p173_p10), 261120  }
   0xf   : > { %176 = sbr.rel (%p173_p10) target bundleno = 261 (0x105), region = 32  ;;  %p204_p11 = scmp.lt.s32.totalorder (!%p173_p10), %s478_s28, 15  ;;  %501 = vmatprep.subr.bf16.mxu0 (!%p173_p10), %v570_v0  ;;  %511 = vmatprep.subr.bf16.mxu1 (!%p173_p10), %v570_v0  ;;  %v480_v5 = vld [vmem:[%s812_s2] ss:$0 sm:$0xff] (!%p173_p10) }
  0x10   : > { %502 = vmatpush3.bf16.msra.mxu0 (!%p173_p10), %v570_v0  ;;  %512 = vmatpush3.bf16.msra.mxu1 (!%p173_p10), %v570_v0  ;;  %s477_s9 = sshll.u32 (!%p173_p10), %s200_s6, 6  ;;  %s495_s10 = sshll.u32 (!%p173_p10), %s645_s15, 10 }
  0x11   : > { %s202_s11 = scalar_lea.vmem (!%p173_p10), [#allocation2], %s477_s9  ;;  %s753_s21 = scalar_lea.hbm (!%p173_p10), %s813_s3, %s495_s10 }
  0x12   : > { %s371_s18 = sshll.u32 (!%p173_p10), %s202_s11, 4  ;;  %s764_s23 = scalar_lea.sflag (!%p173_p10), [#allocation3], %s200_s6  ;;  %s755_s18 = int_to_ptr.vmem [resolvable:$true] %s371_s18 }
  0x13   : > { %s575_s26 = scalar_lea.vmem (!%p173_p10), %s755_s18, 1024  ;;  %s655_s27 = smov (!%p173_p10), [#allocation2]  }
  0x14   : > { %p576_p12 = scmp.ne.s32.totalorder (!%p173_p10), %s755_s18, %s575_s26 }
  0x16   : > { %s824_s28 = smov (!%p204_p11, %s478_s28), 15  ;;  %p577_p13 = pnand %p576_p12, %p718_p4 }
  0x17   : > { %s479_s29 = sshll.u32 %s824_s28, 2  ;;  %s579_s28 = sshll.u32 %s655_s27, 4  ;;  %s580_s28 = int_to_ptr.vmem [resolvable:$false] %s579_s28 }
  0x18   : > { %s207_s5 = scalar_lea.vmem %s810_s0, %s479_s29  ;;  %p578_p0 = pneg %p577_p13 }
  0x19   : > { %v571_v1 = vld [vmem:[%s207_s5] sm:$0xff]   ;;  %v572_v2 = vld [vmem:[%s207_s5 + $0x10] sm:$0xff]   ;;  %v573_v3 = vld [vmem:[%s207_s5 + $0x8] sm:$0xff]   ;;  %s581_s29 = scalar_lea.vmem %s580_s28, 2048  ;;  %p582_p1 = scmp.lt.s32.totalorder %s755_s18, %s580_s28 }
  0x1a   : > { %503 = vmatprep.mubr.msk.bf16.mxu0 %vm261_vm0, %v571_v1  ;;  %507 = vmatprep.mubr.msk.bf16.mxu1 %vm261_vm0, %v572_v2  ;;  %v574_v4 = vld [vmem:[%s207_s5 + $0x18] sm:$0xff]   ;;  %p583_p2 = scmp.lt.s32.totalorder %s581_s29, %s575_s26 }
  0x1b   : > { %504 = vmatmul.mubr.msk.bf16.vlgmr.msra.gmra.mrb[0].mxu0 %vm261_vm0, %v573_v3  ;;  %508 = vmatmul.mubr.msk.bf16.vlgmr.msra.gmra.mrb[0].mxu1 %vm261_vm0, %v574_v4 }
  0x1c   : > { %p584_p3 = por %p583_p2, %p582_p1 }
  0x1e   : > { %p585_p5 = pnand %p584_p3, %p578_p0 }
  0xee   : > { %v505_v6 = vpop.f32.mrb[0].mxu0  ;;  %v509_v8 = vpop.f32.mrb[0].mxu1 }
  0xef   : > { %v317_v7 = vadd.f32 %v505_v6, %v480_v5  ;;  %v308_v9 = vpop.f32.mrb[1].mxu0  ;;  %v333_v10 = vadd.f32 %v509_v8, %v480_v5  ;;  %v324_v12 = vpop.f32.mrb[1].mxu1 }
  0xf0   : > { %v309_v11 = vadd.f32 %v480_v5, %v308_v9  ;;  %v506_v13 = vpop.f32.mrb[2].mxu0  ;;  %v325_v15 = vadd.f32 %v480_v5, %v324_v12  ;;  %v510_v17 = vpop.f32.mrb[2].mxu1 }
  0xf1   : > { %v341_v14 = vmax.f32 %v317_v7, 0.0  ;;  %v320_v16 = vadd.f32 %v506_v13, %v480_v5  ;;  %v311_v18 = vpop.f32.mrb[3].mxu0  ;;  %v345_v19 = vmax.f32 %v333_v10, 0.0  ;;  %v336_v21 = vadd.f32 %v510_v17, %v480_v5  ;;  %v327_v23 = vpop.f32.mrb[3].mxu1 }
  0xf2   : > { %v339_v20 = vmax.f32 %v309_v11, 0.0  ;;  %v312_v22 = vadd.f32 %v480_v5, %v311_v18  ;;  %v343_v24 = vmax.f32 %v325_v15, 0.0  ;;  %v328_v26 = vadd.f32 %v480_v5, %v327_v23 }
  0xf3   : > { %350 = vst.msk [vmem:[%s202_s11 + $0x10] sm:$0xff] %vm347_vm1, %v341_v14  ;;  %v342_v25 = vmax.f32 %v320_v16, 0.0  ;;  %354 = vst.msk [vmem:[%s202_s11 + $0x30] sm:$0xff] %vm347_vm1, %v345_v19  ;;  %v346_v27 = vmax.f32 %v336_v21, 0.0 }
  0xf4   : > { %348 = vst.msk [vmem:[%s202_s11] sm:$0xff] %vm347_vm1, %v339_v20  ;;  %v340_v28 = vmax.f32 %v312_v22, 0.0  ;;  %352 = vst.msk [vmem:[%s202_s11 + $0x20] sm:$0xff] %vm347_vm1, %v343_v24  ;;  %v344_v29 = vmax.f32 %v328_v26, 0.0 }
  0xf5   : > { %351 = vst.msk [vmem:[%s202_s11 + $0x18] sm:$0xff] %vm347_vm1, %v342_v25  ;;  %355 = vst.msk [vmem:[%s202_s11 + $0x38] sm:$0xff] %vm347_vm1, %v346_v27 }
  0xf6   : > { %349 = vst.msk [vmem:[%s202_s11 + $0x8] sm:$0xff] %vm347_vm1, %v340_v28  ;;  %353 = vst.msk [vmem:[%s202_s11 + $0x28] sm:$0xff] %vm347_vm1, %v344_v29 }
  0xf7   : > { %588 = shalt.err (!%p585_p5)
}
  0xf8   : > { %s589_s30 = scalar_lea.hbm %s753_s21, 1024  ;;  %s593_s6 = scalar_lea.hbm %s813_s3, 2048 }
  0xf9   : > { %p590_p6 = scmp.ne.s32.totalorder %s753_s21, %s589_s30  ;;  %p594_p10 = scmp.lt.u32.totalorder %s753_s21, %s813_s3 }
  0xfa   : > { %p595_p11 = scmp.lt.u32.totalorder %s593_s6, %s589_s30  ;;  %p597_p13 = scmp.lt.u32.totalorder %s589_s30, %s753_s21 }
  0xfb   : > { %p591_p7 = pnand %p590_p6, %p718_p4 }
  0xfc   : > { %p596_p12 = por %p595_p11, %p594_p10 }
  0xfd   : > { %p592_p9 = pneg %p591_p7 }
  0xfe   : > { %p598_p0 = por %p597_p13, %p596_p12 }
 0x100   : > { %p599_p1 = pnand %p598_p0, %p592_p9 }
 0x102   : > { %602 = shalt.err (!%p599_p1)
}
 0x103   : > { %s656_s9 = smov 128   ;;  %s657_s10 = smov 8  }
 0x104   : > { %513 = dma.vmem_to_hbm [thread:$0]  (%p718_p4), %s755_s18, 1024, %s753_s21, %s764_s23, %s656_s9, %s656_s9, %s657_s10  }
 0x105 PF: > { %p519_p2 = scmp.ge.s32.totalorder %s653_s17, 2  ;;  %s386_s11 = sand.u32 1, %s633_s12  }
 0x106   : > { %s387_s15 = scalar_lea.sflag [#allocation3], %s386_s11 }
 0x107   : > { %p516_p3 = pnand %p519_p2, %p725_p8 }
 0x109   : > { %628 = dma.done.wait (!%p516_p3), %s387_s15, 1024  }
 0x10a   : > { %630 = vsyncadd (!%p516_p3), %s387_s15, 4294966272  ;;  %s16_s17 = sadd.s32 1, %s653_s17   ;;  %s816_s12 = smov %s637_s13 }
 0x10b   : > { %p13_p5 = scmp.ge.s32.totalorder %s16_s17, 4   ;;  %s817_s13 = smov %s641_s14 }
 0x10c   : > { %s818_s14 = smov %s731_s25  ;;  %s819_s15 = smov %s649_s16 }
 0x10d   : > { %s820_s16 = smov %s822_s20  ;;  %15 = sbr.rel (!%p13_p5) target bundleno = 4 (0x4), region = 73 }
 0x114   :  { %392 = vsyncpa [#allocation3], 1 }
 0x115   :  { %394 = vsyncpa [#allocation3 + $0x1], 1 }

</bundles_post_ra>
